<compile_context>
chip_gen: v7x
topology: tpu7x:2x2x1
jax: 0.10.0
libtpu: 0.0.40
codegen_flags: <defaults>
</compile_context>

<pallas_src>
import functools

import jax
import jax.numpy as jnp
from jax import lax
from jax.experimental import pallas as pl
from jax.experimental.pallas import tpu as pltpu


def _round_up(a, m):
    return ((a + m - 1) // m) * m


def odin_kernel(x_ref, w_ref, b_ref, o_ref, *, epsilon):
    x = x_ref[...]                                       # [TN, D]  f32 (unrounded)
    w_bf = w_ref[...]                                    # [D, Kp]  bf16 (MXU operand)
    b = b_ref[...]                                       # [1, Kp]  f32 (pads = -1e30)

    # ---------- first forward pass: z = x @ W + b ----------
    x_bf = x.astype(jnp.bfloat16)                        # bf16 only for the MXU
    z = jnp.dot(x_bf, w_bf, preferred_element_type=jnp.float32) + b     # [TN, Kp] f32
    m = jnp.max(z, axis=1, keepdims=True)                # padded classes never win
    e = jnp.exp(z - m)                                   # pads underflow to 0
    s = jnp.sum(e, axis=1, keepdims=True)
    p = e * pl.reciprocal(s, approx=True)                # softmax(z); error ~0.4%,
                                                         # only enters via eps*grad

    # losses = log_softmax(z).max(1)[0]; argmax of log_softmax == argmax of z.
    n, kp = z.shape
    col = lax.broadcasted_iota(jnp.int32, (n, kp), 1)
    # first-argmax tie-break (torch.max semantics); m is the exact max so `z == m`
    # marks exactly the maximal entries.
    idx = jnp.min(jnp.where(z == m, col, kp), axis=1, keepdims=True)
    onehot = (col == idx).astype(jnp.float32)            # [TN, Kp], zero on pads

    # Analytic input gradient of sum_i max_c log_softmax(z_i)_c.
    # Contract the class axis of grad_z with the class axis of W (no transpose).
    grad_z = (onehot - p).astype(jnp.bfloat16)           # [TN, Kp]
    grad_x = lax.dot_general(
        grad_z, w_bf,
        dimension_numbers=(((1,), (1,)), ((), ())),
        preferred_element_type=jnp.float32,
    )                                                    # [TN, D] f32

    # FGSM perturbation (module ADDS the gradient) + clamp to [0, 1]; all in f32.
    x_adv = jnp.clip(x + epsilon * grad_x, 0.0, 1.0)

    # ---------- second forward pass, as a delta matmul ----------
    # z2 = x_adv @ W + b = z + (x_adv - x) @ W ; delta is tiny so bf16(delta)
    # keeps ~0.4% relative precision on the perturbation instead of erasing it.
    delta = (x_adv - x).astype(jnp.bfloat16)             # [TN, D]
    z2 = z + jnp.dot(delta, w_bf, preferred_element_type=jnp.float32)   # [TN, Kp]
    m2 = jnp.max(z2, axis=1, keepdims=True)
    lse2 = m2 + jnp.log(jnp.sum(jnp.exp(z2 - m2), axis=1, keepdims=True))
    o_ref[...] = (z2 - lse2).astype(o_ref.dtype)         # log_softmax(z2)


def model_odin_forward(x_nchw, w, b, epsilon, *, max_tn=256, k_pad=128):
    """ModelODIN.forward: FGSM input preprocessing then classifier forward."""
    n = x_nchw.shape[0]
    x2d = x_nchw.reshape(n, -1).astype(jnp.float32)      # glue: torch .view(N, -1)
    d = x2d.shape[1]
    k = w.shape[1]

    # ---- pad feature / class axes to full 128-lane tiles ----
    d_pad = _round_up(d, 128)
    kp = _round_up(max(k, k_pad), 128)                   # 128 is one full MXU width
                                                         # on v5e; dense on v6e/v7x too

    # ---- batch tiling: 16-row aligned; >= 2 tiles when possible (v7x megacore) ----
    n_pad = _round_up(n, 16)
    if n_pad <= 32:
        tn = n_pad                                       # launch-overhead bound anyway
    elif n_pad <= 2 * max_tn:
        tn = _round_up(pl.cdiv(n_pad, 2), 16)            # two tiles -> both v7x cores
    else:
        tn = max_tn
    n_pad = _round_up(n_pad, tn)
    n_tiles = n_pad // tn

    if (n_pad, d_pad) != x2d.shape:
        x2d = jnp.pad(x2d, ((0, n_pad - n), (0, d_pad - d)))
    w_bf = jnp.pad(w.astype(jnp.float32),
                   ((0, d_pad - d), (0, kp - k))).astype(jnp.bfloat16)
    # Fake classes get a huge negative bias: they never win max/argmax and their
    # softmax weight underflows to 0, so the kernel needs no masking.
    b_pad = jnp.concatenate(
        [b.reshape(1, k).astype(jnp.float32),
         jnp.full((1, kp - k), -1e30, dtype=jnp.float32)], axis=1)

    kernel = functools.partial(odin_kernel, epsilon=float(epsilon))
    out = pl.pallas_call(
        kernel,
        out_shape=jax.ShapeDtypeStruct((n_pad, kp), jnp.float32),
        grid=(n_tiles,),
        in_specs=[
            pl.BlockSpec((tn, d_pad), lambda i: (i, 0)),   # x: f32, tiled along batch
            pl.BlockSpec((d_pad, kp), lambda i: (0, 0)),   # W: bf16, resident
            pl.BlockSpec((1, kp), lambda i: (0, 0)),       # b: f32, resident
        ],
        out_specs=pl.BlockSpec((tn, kp), lambda i: (i, 0)),  # lane-dense (Kp=128)
        compiler_params=pltpu.CompilerParams(
            dimension_semantics=("parallel",),
            vmem_limit_bytes=32 * 1024 * 1024),
    )(x2d, w_bf, b_pad)
    return out[:n, :k]


def _reference(x_nchw, w, b, epsilon):
    """Pure-JAX f32 reference of the same forward (sanity check)."""
    n = x_nchw.shape[0]
    x = x_nchw.reshape(n, -1).astype(jnp.float32)

    def max_logprob_sum(xf):
        z = xf @ w + b[None, :]
        return jnp.sum(jnp.max(jax.nn.log_softmax(z, axis=1), axis=1))

    g = jax.grad(max_logprob_sum)(x)
    x_adv = jnp.clip(x + epsilon * g, 0.0, 1.0)
    return jax.nn.log_softmax(x_adv @ w + b[None, :], axis=1)


if __name__ == "__main__":
    # Small shapes consistent with the module: NCHW image batch in [0, 1].
    N, C, H, W = 8, 4, 16, 16
    K = 10                      # number of classes
    D = C * H * W               # 1024

    key = jax.random.PRNGKey(0)
    kx, kw, kb = jax.random.split(key, 3)
    x = jax.random.uniform(kx, (N, C, H, W), dtype=jnp.float32)            # image-like in [0,1]
    w = jax.random.normal(kw, (D, K), dtype=jnp.float32) / jnp.sqrt(D)     # deterministic params
    b = 0.01 * jax.random.normal(kb, (K,), dtype=jnp.float32)

    # TODO(synk): grid_search_variables/test_metrics need real data loaders + sklearn
    # AUROC; epsilon is fixed deterministically to one of the searched values instead.
    epsilon = 0.0014

    out = model_odin_forward(x, w, b, epsilon)
    jax.block_until_ready(out)

    ref = _reference(x, w, b, epsilon)
    assert out.shape == (N, K)
    assert jnp.allclose(out, ref, atol=2e-2, rtol=2e-2), float(jnp.max(jnp.abs(out - ref)))

    print("KERNEL_OK")
</pallas_src>

<mosaic_0001>
module attributes {stable_mosaic.version = 11 : i64} {
  func.func @odin_kernel(%arg0: i32, %arg1: memref<16x1024xf32, #tpu.memory_space<vmem>>, %arg2: memref<1024x128xbf16, #tpu.memory_space<vmem>>, %arg3: memref<1x128xf32, #tpu.memory_space<vmem>>, %arg4: memref<16x128xf32, #tpu.memory_space<vmem>>) attributes {dimension_semantics = [#tpu.dimension_semantics<parallel>], iteration_bounds = array<i64: 1>, scalar_prefetch = 0 : i64, scratch_operands = 0 : i64, tpu.core_type = #tpu.core_type<tc>, window_params = [{transform_indices = @transform_0, window_bounds = array<i64: 16, 1024>}, {pipeline_mode = #tpu.pipeline_mode<synchronous>, transform_indices = @transform_1, window_bounds = array<i64: 1024, 128>}, {pipeline_mode = #tpu.pipeline_mode<synchronous>, transform_indices = @transform_2, window_bounds = array<i64: 1, 128>}, {transform_indices = @transform_3, window_bounds = array<i64: 16, 128>}]} {
    %c0 = arith.constant 0 : index
    %c0_0 = arith.constant 0 : index
    %0 = vector.load %arg1[%c0, %c0_0] : memref<16x1024xf32, #tpu.memory_space<vmem>>, vector<16x1024xf32>
    %c0_1 = arith.constant 0 : index
    %c0_2 = arith.constant 0 : index
    %1 = vector.load %arg2[%c0_1, %c0_2] : memref<1024x128xbf16, #tpu.memory_space<vmem>>, vector<1024x128xbf16>
    %c0_3 = arith.constant 0 : index
    %c0_4 = arith.constant 0 : index
    %2 = vector.load %arg3[%c0_3, %c0_4] : memref<1x128xf32, #tpu.memory_space<vmem>>, vector<1x128xf32>
    %3 = arith.truncf %0 : vector<16x1024xf32> to vector<16x1024xbf16>
    %cst = arith.constant dense<0.000000e+00> : vector<16x128xf32>
    %4 = tpu.matmul %3, %1, %cst {dimension_numbers = #tpu.dot_dimension_numbers<[1], [0], [0], [1], [0, 0, 1, 1], [], []>} : vector<16x1024xbf16>, vector<1024x128xbf16>, vector<16x128xf32> -> vector<16x128xf32>
    %5 = vector.broadcast %2 : vector<1x128xf32> to vector<16x128xf32>
    %6 = arith.addf %4, %5 : vector<16x128xf32>
    %cst_5 = arith.constant dense<0xFF800000> : vector<16xf32>
    %7 = vector.multi_reduction <maximumf>, %6, %cst_5 [1] : vector<16x128xf32> to vector<16xf32>
    %8 = vector.shape_cast %7 : vector<16xf32> to vector<16x1xf32>
    %9 = vector.broadcast %8 : vector<16x1xf32> to vector<16x128xf32>
    %10 = arith.subf %6, %9 : vector<16x128xf32>
    %11 = math.exp %10 : vector<16x128xf32>
    %cst_6 = arith.constant dense<0.000000e+00> : vector<16xf32>
    %12 = vector.multi_reduction <add>, %11, %cst_6 [1] : vector<16x128xf32> to vector<16xf32>
    %13 = vector.shape_cast %12 : vector<16xf32> to vector<16x1xf32>
    %14 = tpu.reciprocal %13 {approx = true} : vector<16x1xf32> -> vector<16x1xf32>
    %15 = vector.broadcast %14 : vector<16x1xf32> to vector<16x128xf32>
    %16 = arith.mulf %11, %15 : vector<16x128xf32>
    %17 = tpu.iota {dimensions = array<i32: 1>} : vector<16x128xi32>
    %18 = vector.broadcast %8 : vector<16x1xf32> to vector<16x128xf32>
    %19 = arith.cmpf oeq, %6, %18 : vector<16x128xf32>
    %c128_i32 = arith.constant 128 : i32
    %20 = vector.broadcast %c128_i32 : i32 to vector<16x128xi32>
    %21 = arith.select %19, %17, %20 : vector<16x128xi1>, vector<16x128xi32>
    %cst_7 = arith.constant dense<2147483647> : vector<16xi32>
    %22 = vector.multi_reduction <minsi>, %21, %cst_7 [1] : vector<16x128xi32> to vector<16xi32>
    %23 = vector.shape_cast %22 : vector<16xi32> to vector<16x1xi32>
    %24 = vector.broadcast %23 : vector<16x1xi32> to vector<16x128xi32>
    %25 = arith.cmpi eq, %17, %24 : vector<16x128xi32>
    %26 = arith.extui %25 : vector<16x128xi1> to vector<16x128xi32>
    %27 = arith.sitofp %26 : vector<16x128xi32> to vector<16x128xf32>
    %28 = arith.subf %27, %16 : vector<16x128xf32>
    %29 = arith.truncf %28 : vector<16x128xf32> to vector<16x128xbf16>
    %cst_8 = arith.constant dense<0.000000e+00> : vector<16x1024xf32>
    %30 = tpu.matmul %29, %1, %cst_8 {dimension_numbers = #tpu.dot_dimension_numbers<[1], [1], [0], [0], [0, 0, 1, 0], [], []>} : vector<16x128xbf16>, vector<1024x128xbf16>, vector<16x1024xf32> -> vector<16x1024xf32>
    %cst_9 = arith.constant 1.400000e-03 : f32
    %31 = vector.broadcast %cst_9 : f32 to vector<16x1024xf32>
    %32 = arith.mulf %31, %30 : vector<16x1024xf32>
    %33 = arith.addf %0, %32 : vector<16x1024xf32>
    %cst_10 = arith.constant 0.000000e+00 : f32
    %cst_11 = arith.constant 1.000000e+00 : f32
    %34 = vector.broadcast %cst_10 : f32 to vector<16x1024xf32>
    %35 = arith.maximumf %34, %33 : vector<16x1024xf32>
    %36 = vector.broadcast %cst_11 : f32 to vector<16x1024xf32>
    %37 = arith.minimumf %36, %35 : vector<16x1024xf32>
    %38 = arith.subf %37, %0 : vector<16x1024xf32>
    %39 = arith.truncf %38 : vector<16x1024xf32> to vector<16x1024xbf16>
    %cst_12 = arith.constant dense<0.000000e+00> : vector<16x128xf32>
    %40 = tpu.matmul %39, %1, %cst_12 {dimension_numbers = #tpu.dot_dimension_numbers<[1], [0], [0], [1], [0, 0, 1, 1], [], []>} : vector<16x1024xbf16>, vector<1024x128xbf16>, vector<16x128xf32> -> vector<16x128xf32>
    %41 = arith.addf %6, %40 : vector<16x128xf32>
    %cst_13 = arith.constant dense<0xFF800000> : vector<16xf32>
    %42 = vector.multi_reduction <maximumf>, %41, %cst_13 [1] : vector<16x128xf32> to vector<16xf32>
    %43 = vector.shape_cast %42 : vector<16xf32> to vector<16x1xf32>
    %44 = vector.broadcast %43 : vector<16x1xf32> to vector<16x128xf32>
    %45 = arith.subf %41, %44 : vector<16x128xf32>
    %46 = math.exp %45 : vector<16x128xf32>
    %cst_14 = arith.constant dense<0.000000e+00> : vector<16xf32>
    %47 = vector.multi_reduction <add>, %46, %cst_14 [1] : vector<16x128xf32> to vector<16xf32>
    %48 = vector.shape_cast %47 : vector<16xf32> to vector<16x1xf32>
    %49 = math.log %48 : vector<16x1xf32>
    %50 = arith.addf %43, %49 : vector<16x1xf32>
    %51 = vector.broadcast %50 : vector<16x1xf32> to vector<16x128xf32>
    %52 = arith.subf %41, %51 : vector<16x128xf32>
    %c0_15 = arith.constant 0 : index
    %c0_16 = arith.constant 0 : index
    %53 = vector.load %arg4[%c0_15, %c0_16] : memref<16x128xf32, #tpu.memory_space<vmem>>, vector<16x128xf32>
    tpu.vector_store %arg4[%c0_15, %c0_16], %52 {strides = array<i32>} : memref<16x128xf32, #tpu.memory_space<vmem>>, vector<16x128xf32>,
    return
  }
  func.func @transform_0(%arg0: i32) -> (i32, i32) {
    %c0_i32 = arith.constant 0 : i32
    %c0_i32_0 = arith.constant 0 : i32
    return %arg0, %c0_i32 : i32, i32
  }
  func.func @transform_1(%arg0: i32) -> (i32, i32) {
    %c0_i32 = arith.constant 0 : i32
    %c0_i32_0 = arith.constant 0 : i32
    %c0_i32_1 = arith.constant 0 : i32
    return %c0_i32, %c0_i32_0 : i32, i32
  }
  func.func @transform_2(%arg0: i32) -> (i32, i32) {
    %c0_i32 = arith.constant 0 : i32
    %c0_i32_0 = arith.constant 0 : i32
    %c0_i32_1 = arith.constant 0 : i32
    return %c0_i32, %c0_i32_0 : i32, i32
  }
  func.func @transform_3(%arg0: i32) -> (i32, i32) {
    %c0_i32 = arith.constant 0 : i32
    %c0_i32_0 = arith.constant 0 : i32
    return %arg0, %c0_i32 : i32, i32
  }
}

</mosaic_0001>

<bundles_post_ra>
// kernel: tpu_custom_call.1
= control target key start
LH: loop header
LB: loop body
LE: loop exit
PB: predicated region body
PF: predicated region fallthrough
CT: control target
= control target key end

     0   :  { %8 = vsyncpa [#allocation3], 0  ;;  %s2236_s0 = inlined_call_operand.hbm [shape: f32[16,1024], index: 0, kind: input, shape index: {}]   ;;  %s2237_s1 = inlined_call_operand.hbm [shape: bf16[1024,128], index: 1, kind: input, shape index: {}]   ;;  %s2238_s2 = inlined_call_operand.vmem [shape: f32[1,128], index: 2, kind: input, shape index: {}]   ;;  %s2239_s3 = inlined_call_operand.hbm [shape: f32[16,128], index: 3, kind: output, shape index: {}]  }
   0x1   :  { %9 = vsyncpa [#allocation6], 0 }
   0x2   :  { %10 = vsyncpa [#allocation4], 0  ;;  %s1756_s12 = smov [#allocation2]   ;;  %s1684_s16 = scalar_lea.hbm %s2236_s0, 2048 }
   0x3   :  { %s16_s13 = sshll.u32 %s1756_s12, 4  ;;  %p1685_p0 = scmp.ne.s32.totalorder %s2236_s0, %s1684_s16  ;;  %s17_s13 = int_to_ptr.vmem [resolvable:$true] %s16_s13 }
   0x4   :  { %p1688_p1 = scmp.lt.u32.totalorder %s1684_s16, %s2236_s0 }
   0x6   :  { %p1690_p2 = pnand %p1688_p1, %p1685_p0 }
   0x8   :  { %1693 = shalt.err (!%p1690_p2)
}
   0x9   :  { %s1694_s21 = scalar_lea.vmem %s17_s13, 2048  ;;  %p1699_p4 = scmp.lt.s32.totalorder %s17_s13, %s17_s13 }
   0xa   :  { %p1695_p3 = scmp.ne.s32.totalorder %s17_s13, %s1694_s21  ;;  %p1700_p5 = scmp.lt.s32.totalorder %s1694_s21, %s1694_s21 }
   0xc   :  { %p1701_p6 = por %p1700_p5, %p1699_p4 }
   0xe   :  { %p1702_p7 = pnand %p1701_p6, %p1695_p3 }
  0x10   :  { %1705 = shalt.err (!%p1702_p7)
}
  0x11   :  { %s1757_s22 = smov 1024   ;;  %s1758_s23 = smov 64  }
  0x12   :  { %22 = dma.hbm_to_vmem [thread:$0]  %s2236_s0, 2048, %s17_s13, [#allocation3], %s1757_s22, %s1757_s22, %s1758_s23  }
  0x13   :  { %s1759_s26 = smov [#allocation5]   ;;  %s1706_s30 = scalar_lea.hbm %s2237_s1, 8192 }
  0x14   :  { %s28_s27 = sshll.u32 %s1759_s26, 4  ;;  %p1707_p8 = scmp.ne.s32.totalorder %s2237_s1, %s1706_s30  ;;  %s29_s27 = int_to_ptr.vmem [resolvable:$true] %s28_s27 }
  0x15   :  { %p1710_p9 = scmp.lt.u32.totalorder %s1706_s30, %s2237_s1 }
  0x17   :  { %p1712_p10 = pnand %p1710_p9, %p1707_p8 }
  0x19   :  { %1715 = shalt.err (!%p1712_p10)
}
  0x1a   :  { %s1716_s8 = scalar_lea.vmem %s29_s27, 8192  ;;  %p1721_p12 = scmp.lt.s32.totalorder %s29_s27, %s29_s27 }
  0x1b   :  { %p1717_p11 = scmp.ne.s32.totalorder %s29_s27, %s1716_s8  ;;  %p1722_p13 = scmp.lt.s32.totalorder %s1716_s8, %s1716_s8 }
  0x1d   :  { %p1723_p0 = por %p1722_p13, %p1721_p12 }
  0x1f   :  { %p1724_p1 = pnand %p1723_p0, %p1717_p11 }
  0x21   :  { %1727 = shalt.err (!%p1724_p1)
}
  0x22   :  { %s1760_s0 = smov 4  }
  0x23   :  { %34 = dma.hbm_to_vmem [thread:$0]  %s2237_s1, 8192, %s29_s27, [#allocation6], %s1758_s23, %s1758_s23, %s1760_s0  }
  0x24   :  { %1750 = dma.done.wait [#allocation3], 2048  }
  0x25   :  { %1751 = vsyncadd [#allocation3], 4294965248 }
  0x26   :  { %1752 = dma.done.wait [#allocation6], 8192  }
  0x27   :  { %1753 = vsyncadd [#allocation6], 4294959104  ;;  %v1809_v0 = vld [vmem:[#allocation5 + $0x40] sm:$0xff]   ;;  %v1820_v4 = vld [vmem:[#allocation5 + $0x48] sm:$0xff]  }
  0x28   :  { %v1811_v1 = vld [vmem:[#allocation5 + $0xc0] sm:$0xff]   ;;  %1347 = vmatprep.subr.bf16.mxu0 %v1809_v0  ;;  %v1823_v5 = vld [vmem:[#allocation5 + $0xc8] sm:$0xff]   ;;  %v1832_v8 = vld [vmem:[#allocation5 + $0x50] sm:$0xff]  }
  0x29   :  { %v1814_v2 = vld [vmem:[#allocation5] sm:$0xff]   ;;  %1369 = vmatprep.subr.bf16.mxu1 %v1811_v1  ;;  %v1826_v6 = vld [vmem:[#allocation5 + $0x8] sm:$0xff]   ;;  %v1835_v9 = vld [vmem:[#allocation5 + $0xd0] sm:$0xff]  }
  0x2a   :  { %v1817_v3 = vld [vmem:[#allocation5 + $0x80] sm:$0xff]   ;;  %1348 = vmatpush3.bf16.msra.mxu0 %v1814_v2  ;;  %v1829_v7 = vld [vmem:[#allocation5 + $0x88] sm:$0xff]   ;;  %v1838_v10 = vld [vmem:[#allocation5 + $0x10] sm:$0xff]  }
  0x2b   :  { %1370 = vmatpush3.bf16.msra.mxu1 %v1817_v3  ;;  %1349 = vmatprep.subr.bf16.mxu0 %v1820_v4  ;;  %v1841_v11 = vld [vmem:[#allocation5 + $0x90] sm:$0xff]   ;;  %v1844_v12 = vld [vmem:[#allocation5 + $0x58] sm:$0xff]   ;;  %v1856_v16 = vld [vmem:[#allocation5 + $0x60] sm:$0xff]  }
  0x2c   :  { %1371 = vmatprep.subr.bf16.mxu1 %v1823_v5  ;;  %v1847_v13 = vld [vmem:[#allocation5 + $0xd8] sm:$0xff]   ;;  %v1859_v17 = vld [vmem:[#allocation5 + $0xe0] sm:$0xff]   ;;  %v1868_v20 = vld [vmem:[#allocation5 + $0x68] sm:$0xff]  }
  0x2d   :  { %v1850_v14 = vld [vmem:[#allocation5 + $0x18] sm:$0xff]   ;;  %v1862_v18 = vld [vmem:[#allocation5 + $0x20] sm:$0xff]   ;;  %2311 = vst [vmem:[#allocation12_spill] sm:$0xff] %v1868_v20  ;;  %v1871_v21 = vld [vmem:[#allocation5 + $0xe8] sm:$0xff]  }
  0x2e   :  { %1350 = vmatpush3.bf16.msra.mxu0 %v1826_v6  ;;  %v1853_v15 = vld [vmem:[#allocation5 + $0x98] sm:$0xff]   ;;  %v1865_v19 = vld [vmem:[#allocation5 + $0xa0] sm:$0xff]   ;;  %2312 = vst [vmem:[#allocation13_spill] sm:$0xff] %v1871_v21  ;;  %v1874_v22 = vld [vmem:[#allocation5 + $0x28] sm:$0xff]  }
  0x2f   :  { %1372 = vmatpush3.bf16.msra.mxu1 %v1829_v7  ;;  %1351 = vmatprep.subr.bf16.mxu0 %v1832_v8  ;;  %2310 = vst [vmem:[#allocation11_spill] sm:$0xff] %v1865_v19  ;;  %2313 = vst [vmem:[#allocation14_spill] sm:$0xff] %v1874_v22  ;;  %v1877_v23 = vld [vmem:[#allocation5 + $0xa8] sm:$0xff]   ;;  %v1880_v24 = vld [vmem:[#allocation5 + $0x70] sm:$0xff]  }
  0x30   :  { %1373 = vmatprep.subr.bf16.mxu1 %v1835_v9  ;;  %2314 = vst [vmem:[#allocation15_spill] sm:$0xff] %v1877_v23  ;;  %2315 = vst [vmem:[#allocation16_spill] sm:$0xff] %v1880_v24  ;;  %v1883_v25 = vld [vmem:[#allocation5 + $0xf0] sm:$0xff]   ;;  %v1892_v28 = vld [vmem:[#allocation5 + $0x78] sm:$0xff]  }
  0x31   :  { %2316 = vst [vmem:[#allocation17_spill] sm:$0xff] %v1883_v25  ;;  %v1886_v26 = vld [vmem:[#allocation5 + $0x30] sm:$0xff]   ;;  %2319 = vst [vmem:[#allocation20_spill] sm:$0xff] %v1892_v28  ;;  %v1895_v29 = vld [vmem:[#allocation5 + $0xf8] sm:$0xff]  }
  0x32   :  { %1352 = vmatpush3.bf16.msra.mxu0 %v1838_v10  ;;  %2317 = vst [vmem:[#allocation18_spill] sm:$0xff] %v1886_v26  ;;  %v1889_v27 = vld [vmem:[#allocation5 + $0xb0] sm:$0xff]   ;;  %2320 = vst [vmem:[#allocation21_spill] sm:$0xff] %v1895_v29  ;;  %v1898_v30 = vld [vmem:[#allocation5 + $0x38] sm:$0xff]  }
  0x33   :  { %1374 = vmatpush3.bf16.msra.mxu1 %v1841_v11  ;;  %1353 = vmatprep.subr.bf16.mxu0 %v1844_v12  ;;  %2318 = vst [vmem:[#allocation19_spill] sm:$0xff] %v1889_v27  ;;  %2321 = vst [vmem:[#allocation22_spill] sm:$0xff] %v1898_v30  ;;  %v1901_v31 = vld [vmem:[#allocation5 + $0xb8] sm:$0xff]   ;;  %v1904_v32 = vld [vmem:[#allocation2 + $0x8] sm:$0xff] }
  0x34   :  { %1375 = vmatprep.subr.bf16.mxu1 %v1847_v13  ;;  %2322 = vst [vmem:[#allocation23_spill] sm:$0xff] %v1901_v31  ;;  %2323 = vst [vmem:[#allocation24_spill] sm:$0xff] %v1904_v32  ;;  %v1906_v33 = vld [vmem:[#allocation2 + $0x48] sm:$0xff]  ;;  %v1908_v34 = vld [vmem:[#allocation2 + $0x18] sm:$0xff] }
  0x35   :  { %2324 = vst [vmem:[#allocation25_spill] sm:$0xff] %v1906_v33  ;;  %2325 = vst [vmem:[#allocation26_spill] sm:$0xff] %v1908_v34  ;;  %v190_v35 = vpack.c.bf16 %v1906_v33, %v1904_v32  ;;  %v1913_v36 = vld [vmem:[#allocation2 + $0x58] sm:$0xff]  ;;  %v1915_v37 = vld [vmem:[#allocation2] sm:$0xff] }
  0x36   :  { %1354 = vmatpush3.bf16.msra.mxu0 %v1850_v14  ;;  %2326 = vst [vmem:[#allocation27_spill] sm:$0xff] %v1913_v36  ;;  %2327 = vst [vmem:[#allocation28_spill] sm:$0xff] %v1915_v37  ;;  %v1917_v38 = vld [vmem:[#allocation2 + $0x40] sm:$0xff]  ;;  %v192_v39 = vpack.c.bf16 %v1913_v36, %v1908_v34  ;;  %v1923_v41 = vld [vmem:[#allocation2 + $0x10] sm:$0xff] }
  0x37   :  { %1376 = vmatpush3.bf16.msra.mxu1 %v1853_v15  ;;  %1355 = vmatprep.subr.bf16.mxu0 %v1856_v16  ;;  %2328 = vst [vmem:[#allocation29_spill] sm:$0xff] %v1917_v38  ;;  %v189_v40 = vpack.c.bf16 %v1917_v38, %v1915_v37  ;;  %2329 = vst [vmem:[#allocation30_spill] sm:$0xff] %v1923_v41  ;;  %v1925_v42 = vld [vmem:[#allocation2 + $0x50] sm:$0xff]  ;;  %v1929_v44 = vld [vmem:[#allocation5 + $0x140] sm:$0xff]  }
  0x38   :  { %1377 = vmatprep.subr.bf16.mxu1 %v1859_v17  ;;  %2330 = vst [vmem:[#allocation31_spill] sm:$0xff] %v1925_v42  ;;  %619 = vmatprep.mubr.bf16.mxu0 %v190_v35  ;;  %v191_v43 = vpack.c.bf16 %v1925_v42, %v1923_v41  ;;  %2331 = vst [vmem:[#allocation32_spill] sm:$0xff] %v1929_v44  ;;  %v1931_v45 = vld [vmem:[#allocation5 + $0x1c0] sm:$0xff]   ;;  %v1940_v48 = vld [vmem:[#allocation5 + $0x148] sm:$0xff]  }
  0x39   :  { %660 = vmatprep.mubr.bf16.mxu1 %v192_v39  ;;  %2332 = vst [vmem:[#allocation33_spill] sm:$0xff] %v1931_v45  ;;  %v1934_v46 = vld [vmem:[#allocation5 + $0x100] sm:$0xff]   ;;  %v1943_v49 = vld [vmem:[#allocation5 + $0x1c8] sm:$0xff]   ;;  %v1952_v52 = vld [vmem:[#allocation5 + $0x150] sm:$0xff]  }
  0x3a   :  { %1356 = vmatpush3.bf16.msra.mxu0 %v1862_v18  ;;  %v1937_v47 = vld [vmem:[#allocation5 + $0x180] sm:$0xff]   ;;  %v1946_v50 = vld [vmem:[#allocation5 + $0x108] sm:$0xff]   ;;  %v1955_v53 = vld [vmem:[#allocation5 + $0x1d0] sm:$0xff]  }
  0x3b   :  { %1378 = vmatpush3.bf16.msra.mxu1 %v1865_v19  ;;  %1357 = vmatprep.subr.bf16.mxu0 %v1868_v20  ;;  %v1949_v51 = vld [vmem:[#allocation5 + $0x188] sm:$0xff]   ;;  %v1958_v54 = vld [vmem:[#allocation5 + $0x110] sm:$0xff]   ;;  %v1964_v56 = vld [vmem:[#allocation5 + $0x158] sm:$0xff]  }
  0x3c   :  { %1379 = vmatprep.subr.bf16.mxu1 %v1871_v21  ;;  %v1961_v55 = vld [vmem:[#allocation5 + $0x190] sm:$0xff]   ;;  %v1967_v57 = vld [vmem:[#allocation5 + $0x1d8] sm:$0xff]   ;;  %v1976_v60 = vld [vmem:[#allocation5 + $0x160] sm:$0xff]  }
  0x3d   :  { %v1970_v58 = vld [vmem:[#allocation5 + $0x118] sm:$0xff]   ;;  %v1979_v61 = vld [vmem:[#allocation5 + $0x1e0] sm:$0xff]   ;;  %v1988_v35 = vld [vmem:[#allocation5 + $0x168] sm:$0xff]  }
  0x3e   :  { %1358 = vmatpush3.bf16.msra.mxu0 %v1874_v22  ;;  %v1973_v59 = vld [vmem:[#allocation5 + $0x198] sm:$0xff]   ;;  %v1982_v62 = vld [vmem:[#allocation5 + $0x120] sm:$0xff]   ;;  %2333 = vst [vmem:[#allocation34_spill] sm:$0xff] %v1988_v35  ;;  %v1991_v39 = vld [vmem:[#allocation5 + $0x1e8] sm:$0xff]  }
  0x3f   :  { %1380 = vmatpush3.bf16.msra.mxu1 %v1877_v23  ;;  %1359 = vmatprep.subr.bf16.mxu0 %v1880_v24  ;;  %v1985_v63 = vld [vmem:[#allocation5 + $0x1a0] sm:$0xff]   ;;  %2334 = vst [vmem:[#allocation35_spill] sm:$0xff] %v1991_v39  ;;  %v2000_v36 = vld [vmem:[#allocation5 + $0x170] sm:$0xff]   ;;  %v2012_v34 = vld [vmem:[#allocation5 + $0x178] sm:$0xff]  }
  0x40   :  { %1381 = vmatprep.subr.bf16.mxu1 %v1883_v25  ;;  %2337 = vst [vmem:[#allocation38_spill] sm:$0xff] %v2000_v36  ;;  %v2003_v33 = vld [vmem:[#allocation5 + $0x1f0] sm:$0xff]   ;;  %2341 = vst [vmem:[#allocation42_spill] sm:$0xff] %v2012_v34  ;;  %v2015_v32 = vld [vmem:[#allocation5 + $0x1f8] sm:$0xff]  }
  0x41   :  { %2338 = vst [vmem:[#allocation39_spill] sm:$0xff] %v2003_v33  ;;  %v2006_v42 = vld [vmem:[#allocation5 + $0x130] sm:$0xff]   ;;  %2342 = vst [vmem:[#allocation43_spill] sm:$0xff] %v2015_v32  ;;  %v2018_v41 = vld [vmem:[#allocation5 + $0x138] sm:$0xff]  }
  0x42   :  { %1360 = vmatpush3.bf16.msra.mxu0 %v1886_v26  ;;  %2339 = vst [vmem:[#allocation40_spill] sm:$0xff] %v2006_v42  ;;  %v2009_v38 = vld [vmem:[#allocation5 + $0x1b0] sm:$0xff]   ;;  %2343 = vst [vmem:[#allocation44_spill] sm:$0xff] %v2018_v41  ;;  %v2021_v37 = vld [vmem:[#allocation5 + $0x1b8] sm:$0xff]  }
  0x43   :  { %1382 = vmatpush3.bf16.msra.mxu1 %v1889_v27  ;;  %1361 = vmatprep.subr.bf16.mxu0 %v1892_v28  ;;  %2340 = vst [vmem:[#allocation41_spill] sm:$0xff] %v2009_v38 }
  0x44   :  { %1383 = vmatprep.subr.bf16.mxu1 %v1895_v29 }
  0x46   :  { %1362 = vmatpush3.bf16.msra.mxu0 %v1898_v30 }
  0x47   :  { %1384 = vmatpush3.bf16.msra.mxu1 %v1901_v31  ;;  %1391 = vmatprep.subr.bf16.mxu0 %v1929_v44 }
  0x48   :  { %1413 = vmatprep.subr.bf16.mxu1 %v1931_v45 }
  0x49   :  { %620 = vmatmul.mubr.bf16.vlgmr.msra.gmra.mrb[0].mxu0 %v189_v40  ;;  %v1994_v40 = vld [vmem:[#allocation5 + $0x128] sm:$0xff]  }
  0x4a   :  { %661 = vmatmul.mubr.bf16.vlgmr.msra.gmra.mrb[0].mxu1 %v191_v43  ;;  %1392 = vmatpush3.bf16.msra.mxu0 %v1934_v46  ;;  %2335 = vst [vmem:[#allocation36_spill] sm:$0xff] %v1994_v40  ;;  %v1997_v43 = vld [vmem:[#allocation5 + $0x1a8] sm:$0xff]  }
  0x4b   :  { %1414 = vmatpush3.bf16.msra.mxu1 %v1937_v47  ;;  %1393 = vmatprep.subr.bf16.mxu0 %v1940_v48  ;;  %2336 = vst [vmem:[#allocation37_spill] sm:$0xff] %v1997_v43 }
  0x4c   :  { %1415 = vmatprep.subr.bf16.mxu1 %v1943_v49 }
  0x4e   :  { %1394 = vmatpush3.bf16.msra.mxu0 %v1946_v50 }
  0x4f   :  { %1416 = vmatpush3.bf16.msra.mxu1 %v1949_v51  ;;  %1395 = vmatprep.subr.bf16.mxu0 %v1952_v52 }
  0x50   :  { %1417 = vmatprep.subr.bf16.mxu1 %v1955_v53 }
  0x52   :  { %1396 = vmatpush3.bf16.msra.mxu0 %v1958_v54 }
  0x53   :  { %1418 = vmatpush3.bf16.msra.mxu1 %v1961_v55  ;;  %1397 = vmatprep.subr.bf16.mxu0 %v1964_v56 }
  0x54   :  { %1419 = vmatprep.subr.bf16.mxu1 %v1967_v57 }
  0x56   :  { %1398 = vmatpush3.bf16.msra.mxu0 %v1970_v58 }
  0x57   :  { %1420 = vmatpush3.bf16.msra.mxu1 %v1973_v59  ;;  %1399 = vmatprep.subr.bf16.mxu0 %v1976_v60 }
  0x58   :  { %1421 = vmatprep.subr.bf16.mxu1 %v1979_v61 }
  0x5a   :  { %1400 = vmatpush3.bf16.msra.mxu0 %v1982_v62 }
  0x5b   :  { %1422 = vmatpush3.bf16.msra.mxu1 %v1985_v63  ;;  %1401 = vmatprep.subr.bf16.mxu0 %v1988_v35  ;;  %v2046_v35 = vld [vmem:[#allocation2 + $0x70] sm:$0xff] }
  0x5c   :  { %1423 = vmatprep.subr.bf16.mxu1 %v1991_v39  ;;  %v2041_v39 = vld [vmem:[#allocation2 + $0x30] sm:$0xff]  ;;  %2351 = vst [vmem:[#allocation52_spill] sm:$0xff] %v2046_v35 }
  0x5d   :  { %2350 = vst [vmem:[#allocation51_spill] sm:$0xff] %v2041_v39 }
  0x5e   :  { %1402 = vmatpush3.bf16.msra.mxu0 %v1994_v40  ;;  %v2039_v40 = vld [vmem:[#allocation2 + $0x60] sm:$0xff] }
  0x5f   :  { %1424 = vmatpush3.bf16.msra.mxu1 %v1997_v43  ;;  %1403 = vmatprep.subr.bf16.mxu0 %v2000_v36  ;;  %v2023_v36 = vld [vmem:[#allocation2 + $0x28] sm:$0xff]  ;;  %v2030_v43 = vld [vmem:[#allocation2 + $0x78] sm:$0xff]  ;;  %2349 = vst [vmem:[#allocation50_spill] sm:$0xff] %v2039_v40 }
  0x60   :  { %1425 = vmatprep.subr.bf16.mxu1 %v2003_v33  ;;  %2344 = vst [vmem:[#allocation45_spill] sm:$0xff] %v2023_v36  ;;  %v2026_v33 = vld [vmem:[#allocation2 + $0x68] sm:$0xff]  ;;  %2347 = vst [vmem:[#allocation48_spill] sm:$0xff] %v2030_v43 }
  0x61   :  { %2345 = vst [vmem:[#allocation46_spill] sm:$0xff] %v2026_v33 }
  0x62   :  { %1404 = vmatpush3.bf16.msra.mxu0 %v2006_v42  ;;  %v2028_v42 = vld [vmem:[#allocation2 + $0x38] sm:$0xff] }
  0x63   :  { %1426 = vmatpush3.bf16.msra.mxu1 %v2009_v38  ;;  %1405 = vmatprep.subr.bf16.mxu0 %v2012_v34  ;;  %2346 = vst [vmem:[#allocation47_spill] sm:$0xff] %v2028_v42  ;;  %v194_v34 = vpack.c.bf16 %v2026_v33, %v2023_v36  ;;  %v2037_v38 = vld [vmem:[#allocation2 + $0x20] sm:$0xff] }
  0x64   :  { %1427 = vmatprep.subr.bf16.mxu1 %v2015_v32  ;;  %v196_v32 = vpack.c.bf16 %v2030_v43, %v2028_v42  ;;  %2348 = vst [vmem:[#allocation49_spill] sm:$0xff] %v2037_v38  ;;  %v195_v43 = vpack.c.bf16 %v2046_v35, %v2041_v39 }
  0x65   :  { %701 = vmatprep.mubr.bf16.mxu0 %v194_v34 }
  0x66   :  { %1406 = vmatpush3.bf16.msra.mxu0 %v2018_v41  ;;  %v193_v41 = vpack.c.bf16 %v2039_v40, %v2037_v38  ;;  %742 = vmatprep.mubr.bf16.mxu1 %v196_v32 }
  0x67   :  { %1428 = vmatpush3.bf16.msra.mxu1 %v2021_v37  ;;  %1435 = vmatprep.subr.bf16.mxu0 %v1809_v0 }
  0x68   :  { %1453 = vmatprep.subr.bf16.mxu1 %v1811_v1 }
  0x69   :  { %702 = vmatmul.mubr.bf16.vlgmr.msra.gmra.mrb[4].mxu0 %v193_v41  ;;  %v1280_v41 = vld [vmem:[%s2238_s2] ss:$0 sm:$0xff]  ;;  %s1762_s2 = smov [#allocation7]  }
  0x6a   :  { %743 = vmatmul.mubr.bf16.vlgmr.msra.gmra.mrb[4].mxu1 %v195_v43  ;;  %s1267_s12 = sshll.u32 %s1762_s2, 4  ;;  %s1268_s12 = int_to_ptr.vmem [resolvable:$true] %s1267_s12 }
  0x6b   :  { %s1728_s13 = scalar_lea.vmem %s1268_s12, 256  ;;  %p1733_p3 = scmp.lt.s32.totalorder %s1268_s12, %s1268_s12 }
  0x6c   :  { %p1729_p2 = scmp.ne.s32.totalorder %s1268_s12, %s1728_s13  ;;  %p1734_p4 = scmp.lt.s32.totalorder %s1728_s13, %s1728_s13 }
  0x6e   :  { %p1735_p5 = por %p1734_p4, %p1733_p3 }
  0x6f   :  { %1436 = vmatpush3.bf16.xpose.msra.mxu0 %v1814_v2 }
  0x70   :  { %1454 = vmatpush3.bf16.xpose.msra.mxu1 %v1817_v3  ;;  %1437 = vmatprep.subr.bf16.mxu0 %v1820_v4  ;;  %p1736_p6 = pnand %p1735_p5, %p1729_p2 }
  0x71   :  { %1455 = vmatprep.subr.bf16.mxu1 %v1823_v5 }
  0x77   :  { %1438 = vmatpush3.bf16.xpose.msra.mxu0 %v1826_v6 }
  0x78   :  { %1456 = vmatpush3.bf16.xpose.msra.mxu1 %v1829_v7  ;;  %1439 = vmatprep.subr.bf16.mxu0 %v1832_v8 }
  0x79   :  { %1457 = vmatprep.subr.bf16.mxu1 %v1835_v9 }
  0x7f   :  { %1440 = vmatpush3.bf16.xpose.msra.mxu0 %v1838_v10 }
  0x80   :  { %1458 = vmatpush3.bf16.xpose.msra.mxu1 %v1841_v11  ;;  %1441 = vmatprep.subr.bf16.mxu0 %v1844_v12 }
  0x81   :  { %1459 = vmatprep.subr.bf16.mxu1 %v1847_v13 }
  0x87   :  { %1442 = vmatpush3.bf16.xpose.msra.mxu0 %v1850_v14 }
  0x88   :  { %1460 = vmatpush3.bf16.xpose.msra.mxu1 %v1853_v15  ;;  %1443 = vmatprep.subr.bf16.mxu0 %v1856_v16 }
  0x89   :  { %1461 = vmatprep.subr.bf16.mxu1 %v1859_v17 }
  0x8f   :  { %1444 = vmatpush3.bf16.xpose.msra.mxu0 %v1862_v18 }
  0x90   :  { %1462 = vmatpush3.bf16.xpose.msra.mxu1 %v1865_v19  ;;  %1445 = vmatprep.subr.bf16.mxu0 %v1868_v20 }
  0x91   :  { %1463 = vmatprep.subr.bf16.mxu1 %v1871_v21 }
  0x97   :  { %1446 = vmatpush3.bf16.xpose.msra.mxu0 %v1874_v22 }
  0x98   :  { %1464 = vmatpush3.bf16.xpose.msra.mxu1 %v1877_v23  ;;  %1447 = vmatprep.subr.bf16.mxu0 %v1880_v24 }
  0x99   :  { %1465 = vmatprep.subr.bf16.mxu1 %v1883_v25 }
  0x9f   :  { %1448 = vmatpush3.bf16.xpose.msra.mxu0 %v1886_v26 }
  0xa0   :  { %1466 = vmatpush3.bf16.xpose.msra.mxu1 %v1889_v27  ;;  %1449 = vmatprep.subr.bf16.mxu0 %v1892_v28 }
  0xa1   :  { %1467 = vmatprep.subr.bf16.mxu1 %v1895_v29 }
  0xa7   :  { %1450 = vmatpush3.bf16.xpose.msra.mxu0 %v1898_v30 }
  0xa8   :  { %1468 = vmatpush3.bf16.xpose.msra.mxu1 %v1901_v31  ;;  %1471 = vmatprep.subr.bf16.mxu0 %v1929_v44 }
  0xa9   :  { %1489 = vmatprep.subr.bf16.mxu1 %v1931_v45 }
 0x11c   :  { %v1363_v32 = vpop.f32.mrb[0].mxu0 }
 0x11d   :  { %v1385_v34 = vpop.f32.mrb[0].mxu1  ;;  %v1364_v43 = vpop.f32.mrb[1].mxu0 }
 0x11e   :  { %v1365_v33 = vadd.f32 %v1364_v43, %v1363_v32  ;;  %v1386_v35 = vpop.f32.mrb[1].mxu1  ;;  %v1366_v40 = vpop.f32.mrb[2].mxu0 }
 0x11f   :  { %v1387_v42 = vadd.f32 %v1386_v35, %v1385_v34  ;;  %v1388_v36 = vpop.f32.mrb[2].mxu1  ;;  %v1367_v39 = vpop.f32.mrb[3].mxu0 }
 0x120   :  { %v622_v38 = vadd.f32 %v1365_v33, %v1280_v41  ;;  %v1368_v30 = vadd.f32 %v1367_v39, %v1366_v40  ;;  %v1389_v31 = vpop.f32.mrb[3].mxu1 }
 0x121   :  { %v1390_v29 = vadd.f32 %v1389_v31, %v1388_v36 }
 0x122   :  { %v663_v44 = vadd.f32 %v1387_v42, %v622_v38  ;;  %v625_v28 = vadd.f32 %v1368_v30, %v1280_v41 }
 0x124   :  { %v666_v45 = vadd.f32 %v1390_v29, %v625_v28  ;;  %v769_v28 = vlaneseq }
 0x13c   :  { %v1407_v27 = vpop.f32.mrb[4].mxu0 }
 0x13d   :  { %v1429_v26 = vpop.f32.mrb[4].mxu1  ;;  %v1408_v25 = vpop.f32.mrb[5].mxu0 }
 0x13e   :  { %v1409_v24 = vadd.f32 %v1408_v25, %v1407_v27  ;;  %v1430_v23 = vpop.f32.mrb[5].mxu1  ;;  %v1410_v22 = vpop.f32.mrb[6].mxu0  ;;  %v770_v25 = vand.u32 127, %v769_v28 }
 0x13f   :  { %v1431_v21 = vadd.f32 %v1430_v23, %v1429_v26  ;;  %v1432_v32 = vpop.f32.mrb[6].mxu1  ;;  %v1411_v43 = vpop.f32.mrb[7].mxu0 }
 0x140   :  { %v704_v20 = vadd.f32 %v1409_v24, %v663_v44  ;;  %v1412_v35 = vadd.f32 %v1411_v43, %v1410_v22  ;;  %v1433_v34 = vpop.f32.mrb[7].mxu1 }
 0x141   :  { %v1434_v19 = vadd.f32 %v1433_v34, %v1432_v32 }
 0x142   :  { %v2086_v33 = vadd.f32 %v1431_v21, %v704_v20  ;;  %v707_v39 = vadd.f32 %v1412_v35, %v666_v45 }
 0x144   :  { %v2088_v31 = vadd.f32 %v1434_v19, %v707_v39  ;;  %751 = vmax.xlane.f32.xlu0 %v2086_v33 }
 0x146   :  { %2352 = vst [vmem:[#allocation53_spill] sm:$0xff] %v2088_v31 }
 0x148   :  { %753 = vmax.xlane.f32.xlu0 %v2088_v31 }
 0x1d1   :  { %v752_v27 = vpop.xlane.xlu0 %751 }
 0x1d2   :  { %v755_v23 = vsub.f32 %v2086_v33, %v752_v27  ;;  %vm771_vm0 = vcmp.eq.f32.partialorder %v2086_v33, %v752_v27 }
 0x1d3   :  { %v773_v24 = vsel %vm771_vm0, %v770_v25, 128 }
 0x1d4   :  { %v757_v22 = vmul.f32 1.442695, %v755_v23  ;;  %v776_v26 = vshra.s32 %v773_v24, 16  ;;  %v775_v45 = vand.u32 65535, %v773_v24 }
 0x1d5   :  { %v754_v29 = vpop.xlane.xlu0 %753 }
 0x1d6   :  { %1668 = vpow2.f32 %v757_v22  ;;  %v756_v20 = vsub.f32 %v2088_v31, %v754_v29  ;;  %vm772_vm1 = vcmp.eq.f32.partialorder %v2088_v31, %v754_v29  ;;  %v778_v19 = vcvt.s32.f32 %v776_v26 }
 0x1d7   :  { %v774_v21 = vsel %vm772_vm1, %v770_v25, 128  ;;  %v777_v41 = vcvt.s32.f32 %v775_v45 }
 0x1d8   :  { %v759_v30 = vmul.f32 1.442695, %v756_v20  ;;  %779 = vmin.xlane.f32.xlu1 %v778_v19  ;;  %v790_v36 = vshra.s32 %v774_v21, 16  ;;  %v789_v32 = vand.u32 65535, %v774_v21 }
 0x1da   :  { %1670 = vpow2.f32 %v759_v30  ;;  %v792_v38 = vcvt.s32.f32 %v790_v36  ;;  %v791_v34 = vcvt.s32.f32 %v789_v32 }
 0x1dc   :  { %793 = vmin.xlane.f32.xlu1 %v792_v38 }
 0x1e0   :  { %v1669_v42 = vpop.eup %1668 }
 0x1e1   :  { %761 = vadd.xlane.f32.xlu0 %v1669_v42 }
 0x1e4   :  { %v1671_v44 = vpop.eup %1670 }
 0x1e5   :  { %763 = vadd.xlane.f32.xlu1 %v1671_v44 }
 0x265   :  { %v780_v40 = vpop.xlane.xlu1 %779 }
 0x266   :  { %vm781_vm2 = vcmp.eq.f32.partialorder %v778_v19, %v780_v40  ;;  %v786_v23 = vcvt.f32.s32 %v780_v40 }
 0x267   :  { %v782_v43 = vsel %vm781_vm2, %v777_v41, inf }
 0x268   :  { %783 = vmin.xlane.f32.xlu0 %v782_v43  ;;  %v787_v26 = vshll.u32 %v786_v23, 16  ;;  %v2357_v23 = vld [vmem:[#allocation38_spill] sm:$0xff] }
 0x269   :  { %v794_v35 = vpop.xlane.xlu1 %793 }
 0x26a   :  { %vm795_vm3 = vcmp.eq.f32.partialorder %v792_v38, %v794_v35  ;;  %v800_v29 = vcvt.f32.s32 %v794_v35  ;;  %v1761_v38 = vmov 0.0   ;;  %v2356_v35 = vld [vmem:[#allocation37_spill] sm:$0xff] }
 0x26b   :  { %v796_v39 = vsel %vm795_vm3, %v791_v34, inf }
 0x26c   :  { %797 = vmin.xlane.f32.xlu1 %v796_v39  ;;  %v801_v19 = vshll.u32 %v800_v29, 16  ;;  %v2360_v29 = vld [vmem:[#allocation41_spill] sm:$0xff] }
 0x26e   :  { %v762_v28 = vpop.xlane.xlu0 %761 }
 0x26f   :  { %1672 = vrcp.f32 %v762_v28 }
 0x272   :  { %v764_v27 = vpop.xlane.xlu1 %763 }
 0x273   :  { %1674 = vrcp.f32 %v764_v27 }
 0x279   :  { %v1673_v21 = vpop.eup %1672 }
 0x27a   :  { %v767_v43 = vmul.f32 %v1673_v21, %v1669_v42  ;;  %v2354_v42 = vld [vmem:[#allocation35_spill] sm:$0xff] }
 0x27d   :  { %v1675_v45 = vpop.eup %1674 }
 0x27e   :  { %v768_v34 = vmul.f32 %v1675_v45, %v1671_v44  ;;  %v2355_v44 = vld [vmem:[#allocation36_spill] sm:$0xff] }
 0x2f5   :  { %v784_v22 = vpop.xlane.xlu0 %783 }
 0x2f6   :  { %v785_v24 = vcvt.f32.s32 %v784_v22  ;;  %v2358_v22 = vld [vmem:[#allocation39_spill] sm:$0xff] }
 0x2f8   :  { %v788_v20 = vadd.s32 %v787_v26, %v785_v24  ;;  %v2359_v26 = vld [vmem:[#allocation40_spill] sm:$0xff]  ;;  %v2361_v24 = vld [vmem:[#allocation42_spill] sm:$0xff] }
 0x2f9   :  { %v798_v30 = vpop.xlane.xlu1 %797 }
 0x2fa   :  { %vm803_vm4 = vcmp.eq.s32.totalorder %v770_v25, %v788_v20  ;;  %v799_v36 = vcvt.f32.s32 %v798_v30  ;;  %v2362_v20 = vld [vmem:[#allocation43_spill] sm:$0xff]  ;;  %v2363_v30 = vld [vmem:[#allocation44_spill] sm:$0xff] }
 0x2fb   :  { %v1345_v32 = vsel %vm803_vm4, 1.0, %v1761_v38 }
 0x2fc   :  { %v802_v41 = vadd.s32 %v801_v19, %v799_v36  ;;  %v809_v28 = vsub.f32 %v1345_v32, %v767_v43  ;;  %v2379_v32 = vld [vmem:[#allocation28_spill] sm:$0xff] }
 0x2fe   :  { %vm804_vm5 = vcmp.eq.s32.totalorder %v770_v25, %v802_v41  ;;  %v2353_v25 = vld [vmem:[#allocation34_spill] sm:$0xff] }
 0x2ff   :  { %v1346_v39 = vsel %vm804_vm5, 1.0, %v1761_v38 }
 0x300   :  { %v810_v40 = vsub.f32 %v1346_v39, %v768_v34  ;;  %v2380_v34 = vld [vmem:[#allocation30_spill] sm:$0xff] }
 0x302   :  { %v811_v27 = vpack.c.bf16 %v810_v40, %v809_v28 }
 0x304   :  { %1451 = vmatprep.mubr.bf16.mxu0 %v811_v27  ;;  %1469 = vmatprep.mubr.bf16.mxu1 %v811_v27 }
 0x305   :  { %1452 = vmatmul.mubr.bf16.vlgmr.msra.gmra.mrb[8].mxu0 %v811_v27  ;;  %1470 = vmatmul.mubr.bf16.vlgmr.msra.gmra.mrb[8].mxu1 %v811_v27 }
 0x306   :  { %1472 = vmatpush3.bf16.xpose.msra.mxu0 %v1934_v46  ;;  %1490 = vmatpush3.bf16.xpose.msra.mxu1 %v1937_v47 }
 0x307   :  { %1487 = vmatprep.mubr.bf16.mxu0 %v811_v27  ;;  %1505 = vmatprep.mubr.bf16.mxu1 %v811_v27 }
 0x308   :  { %1473 = vmatprep.subr.bf16.mxu0 %v1940_v48  ;;  %1491 = vmatprep.subr.bf16.mxu1 %v1943_v49 }
 0x30e   :  { %1474 = vmatpush3.bf16.xpose.msra.mxu0 %v1946_v50  ;;  %1492 = vmatpush3.bf16.xpose.msra.mxu1 %v1949_v51 }
 0x30f   :  { %1475 = vmatprep.subr.bf16.mxu0 %v1952_v52  ;;  %1493 = vmatprep.subr.bf16.mxu1 %v1955_v53 }
 0x316   :  { %1476 = vmatpush3.bf16.xpose.msra.mxu0 %v1958_v54  ;;  %1494 = vmatpush3.bf16.xpose.msra.mxu1 %v1961_v55 }
 0x317   :  { %1477 = vmatprep.subr.bf16.mxu0 %v1964_v56  ;;  %1495 = vmatprep.subr.bf16.mxu1 %v1967_v57 }
 0x31e   :  { %1478 = vmatpush3.bf16.xpose.msra.mxu0 %v1970_v58  ;;  %1496 = vmatpush3.bf16.xpose.msra.mxu1 %v1973_v59 }
 0x31f   :  { %1479 = vmatprep.subr.bf16.mxu0 %v1976_v60  ;;  %1497 = vmatprep.subr.bf16.mxu1 %v1979_v61 }
 0x326   :  { %1480 = vmatpush3.bf16.xpose.msra.mxu0 %v1982_v62  ;;  %1498 = vmatpush3.bf16.xpose.msra.mxu1 %v1985_v63 }
 0x327   :  { %1481 = vmatprep.subr.bf16.mxu0 %v2353_v25  ;;  %1499 = vmatprep.subr.bf16.mxu1 %v2354_v42 }
 0x32e   :  { %1482 = vmatpush3.bf16.xpose.msra.mxu0 %v2355_v44  ;;  %1500 = vmatpush3.bf16.xpose.msra.mxu1 %v2356_v35 }
 0x32f   :  { %1483 = vmatprep.subr.bf16.mxu0 %v2357_v23  ;;  %1501 = vmatprep.subr.bf16.mxu1 %v2358_v22 }
 0x336   :  { %1484 = vmatpush3.bf16.xpose.msra.mxu0 %v2359_v26  ;;  %1502 = vmatpush3.bf16.xpose.msra.mxu1 %v2360_v29 }
 0x337   :  { %1485 = vmatprep.subr.bf16.mxu0 %v2361_v24  ;;  %1503 = vmatprep.subr.bf16.mxu1 %v2362_v20 }
 0x33e   :  { %1486 = vmatpush3.bf16.xpose.msra.mxu0 %v2363_v30  ;;  %1504 = vmatpush3.bf16.xpose.msra.mxu1 %v2021_v37 }
 0x33f   :  { %1507 = vmatprep.subr.bf16.mxu0 %v1809_v0  ;;  %1529 = vmatprep.subr.bf16.mxu1 %v1811_v1  ;;  %v2364_v0 = vld [vmem:[#allocation11_spill] sm:$0xff]  ;;  %v2365_v1 = vld [vmem:[#allocation12_spill] sm:$0xff] }
 0x345   :  { %1488 = vmatmul.mubr.bf16.vlgmr.msra.gmra.mrb[12].mxu0 %v811_v27  ;;  %1506 = vmatmul.mubr.bf16.vlgmr.msra.gmra.mrb[12].mxu1 %v811_v27 }
 0x346   :  { %1508 = vmatpush3.bf16.msra.mxu0 %v1814_v2  ;;  %1530 = vmatpush3.bf16.msra.mxu1 %v1817_v3  ;;  %v2366_v2 = vld [vmem:[#allocation13_spill] sm:$0xff]  ;;  %v2367_v3 = vld [vmem:[#allocation14_spill] sm:$0xff] }
 0x347   :  { %1509 = vmatprep.subr.bf16.mxu0 %v1820_v4  ;;  %1531 = vmatprep.subr.bf16.mxu1 %v1823_v5  ;;  %v2368_v4 = vld [vmem:[#allocation15_spill] sm:$0xff]  ;;  %v2369_v5 = vld [vmem:[#allocation16_spill] sm:$0xff] }
 0x34a   :  { %1510 = vmatpush3.bf16.msra.mxu0 %v1826_v6  ;;  %1532 = vmatpush3.bf16.msra.mxu1 %v1829_v7  ;;  %v2370_v6 = vld [vmem:[#allocation17_spill] sm:$0xff]  ;;  %v2371_v7 = vld [vmem:[#allocation18_spill] sm:$0xff] }
 0x34b   :  { %1511 = vmatprep.subr.bf16.mxu0 %v1832_v8  ;;  %1533 = vmatprep.subr.bf16.mxu1 %v1835_v9  ;;  %v2372_v8 = vld [vmem:[#allocation19_spill] sm:$0xff]  ;;  %v2373_v9 = vld [vmem:[#allocation20_spill] sm:$0xff] }
 0x34e   :  { %1512 = vmatpush3.bf16.msra.mxu0 %v1838_v10  ;;  %1534 = vmatpush3.bf16.msra.mxu1 %v1841_v11  ;;  %v2374_v10 = vld [vmem:[#allocation21_spill] sm:$0xff]  ;;  %v2375_v11 = vld [vmem:[#allocation22_spill] sm:$0xff] }
 0x34f   :  { %1513 = vmatprep.subr.bf16.mxu0 %v1844_v12  ;;  %1535 = vmatprep.subr.bf16.mxu1 %v1847_v13  ;;  %v2376_v12 = vld [vmem:[#allocation23_spill] sm:$0xff]  ;;  %v2377_v13 = vld [vmem:[#allocation32_spill] sm:$0xff] }
 0x352   :  { %1514 = vmatpush3.bf16.msra.mxu0 %v1850_v14  ;;  %1536 = vmatpush3.bf16.msra.mxu1 %v1853_v15  ;;  %v2378_v14 = vld [vmem:[#allocation33_spill] sm:$0xff] }
 0x353   :  { %1515 = vmatprep.subr.bf16.mxu0 %v1856_v16  ;;  %1537 = vmatprep.subr.bf16.mxu1 %v1859_v17 }
 0x356   :  { %1516 = vmatpush3.bf16.msra.mxu0 %v1862_v18  ;;  %1538 = vmatpush3.bf16.msra.mxu1 %v2364_v0 }
 0x357   :  { %1517 = vmatprep.subr.bf16.mxu0 %v2365_v1  ;;  %1539 = vmatprep.subr.bf16.mxu1 %v2366_v2  ;;  %v2381_v1 = vld [vmem:[#allocation24_spill] sm:$0xff] }
 0x35a   :  { %1518 = vmatpush3.bf16.msra.mxu0 %v2367_v3  ;;  %1540 = vmatpush3.bf16.msra.mxu1 %v2368_v4  ;;  %v2382_v3 = vld [vmem:[#allocation26_spill] sm:$0xff] }
 0x35b   :  { %1519 = vmatprep.subr.bf16.mxu0 %v2369_v5  ;;  %1541 = vmatprep.subr.bf16.mxu1 %v2370_v6 }
 0x35e   :  { %1520 = vmatpush3.bf16.msra.mxu0 %v2371_v7  ;;  %1542 = vmatpush3.bf16.msra.mxu1 %v2372_v8 }
 0x35f   :  { %1521 = vmatprep.subr.bf16.mxu0 %v2373_v9  ;;  %1543 = vmatprep.subr.bf16.mxu1 %v2374_v10  ;;  %v2383_v9 = vld [vmem:[#allocation29_spill] sm:$0xff] }
 0x362   :  { %1522 = vmatpush3.bf16.msra.mxu0 %v2375_v11  ;;  %1544 = vmatpush3.bf16.msra.mxu1 %v2376_v12  ;;  %v2384_v11 = vld [vmem:[#allocation31_spill] sm:$0xff] }
 0x363   :  { %1551 = vmatprep.subr.bf16.mxu0 %v2377_v13  ;;  %1573 = vmatprep.subr.bf16.mxu1 %v2378_v14 }
 0x3d8   :  { %v846_v15 = vpop.f32.mrb[8].mxu0  ;;  %v889_v16 = vpop.f32.mrb[8].mxu1 }
 0x3d9   :  { %v984_v17 = vmul.f32 0.0014, %v846_v15  ;;  %v986_v18 = vmul.f32 0.0014, %v889_v16  ;;  %v848_v21 = vpop.f32.mrb[9].mxu0  ;;  %v891_v19 = vpop.f32.mrb[9].mxu1 }
 0x3da   :  { %v985_v36 = vmul.f32 0.0014, %v848_v21  ;;  %v987_v45 = vmul.f32 0.0014, %v891_v19  ;;  %v850_v41 = vpop.f32.mrb[10].mxu0  ;;  %v893_v38 = vpop.f32.mrb[10].mxu1 }
 0x3db   :  { %v1000_v43 = vadd.f32 %v984_v17, %v2379_v32  ;;  %v1002_v39 = vadd.f32 %v986_v18, %v2380_v34  ;;  %v992_v28 = vmul.f32 0.0014, %v850_v41  ;;  %v994_v40 = vmul.f32 0.0014, %v893_v38  ;;  %v852_v27 = vpop.f32.mrb[11].mxu0  ;;  %v895_v0 = vpop.f32.mrb[11].mxu1 }
 0x3dc   :  { %v1001_v2 = vadd.f32 %v985_v36, %v2381_v1  ;;  %v1003_v4 = vadd.f32 %v987_v45, %v2382_v3  ;;  %v993_v5 = vmul.f32 0.0014, %v852_v27  ;;  %v995_v6 = vmul.f32 0.0014, %v895_v0  ;;  %v2385_v15 = vld [vmem:[#allocation25_spill] sm:$0xff]  ;;  %v2386_v17 = vld [vmem:[#allocation27_spill] sm:$0xff] }
 0x3dd   :  { %v1016_v7 = vmax.f32 %v1000_v43, 0.0  ;;  %v1018_v8 = vmax.f32 %v1002_v39, 0.0  ;;  %v1008_v10 = vadd.f32 %v992_v28, %v2383_v9  ;;  %v1010_v12 = vadd.f32 %v994_v40, %v2384_v11 }
 0x3de   :  { %v1017_v13 = vmax.f32 %v1001_v2, 0.0  ;;  %v1019_v14 = vmax.f32 %v1003_v4, 0.0  ;;  %v1009_v16 = vadd.f32 %v993_v5, %v2385_v15  ;;  %v1011_v18 = vadd.f32 %v995_v6, %v2386_v17 }
 0x3df   :  { %v1032_v21 = vmin.f32 %v1016_v7, 1.0  ;;  %v1034_v19 = vmin.f32 %v1018_v8, 1.0  ;;  %v1024_v41 = vmax.f32 %v1008_v10, 0.0  ;;  %v1026_v36 = vmax.f32 %v1010_v12, 0.0 }
 0x3e0   :  { %v1033_v38 = vmin.f32 %v1017_v13, 1.0  ;;  %v1035_v45 = vmin.f32 %v1019_v14, 1.0  ;;  %v1025_v27 = vmax.f32 %v1009_v16, 0.0  ;;  %v1027_v0 = vmax.f32 %v1011_v18, 0.0 }
 0x3e1   :  { %v1040_v43 = vmin.f32 %v1024_v41, 1.0  ;;  %v1042_v39 = vmin.f32 %v1026_v36, 1.0  ;;  %v1048_v40 = vsub.f32 %v1032_v21, %v2379_v32  ;;  %v1050_v2 = vsub.f32 %v1034_v19, %v2380_v34  ;;  %v2393_v34 = vld [vmem:[#allocation46_spill] sm:$0xff] }
 0x3e2   :  { %v1041_v31 = vmin.f32 %v1025_v27, 1.0  ;;  %v1043_v28 = vmin.f32 %v1027_v0, 1.0  ;;  %v1049_v6 = vsub.f32 %v1033_v38, %v2381_v1  ;;  %v1051_v7 = vsub.f32 %v1035_v45, %v2382_v3  ;;  %v2394_v3 = vld [vmem:[#allocation48_spill] sm:$0xff] }
 0x3e3   :  { %v1056_v4 = vsub.f32 %v1040_v43, %v2383_v9  ;;  %v1058_v5 = vsub.f32 %v1042_v39, %v2384_v11 }
 0x3e4   :  { %v1057_v8 = vsub.f32 %v1041_v31, %v2385_v15  ;;  %v1059_v10 = vsub.f32 %v1043_v28, %v2386_v17  ;;  %v2389_v31 = vld [vmem:[#allocation45_spill] sm:$0xff] }
 0x3e5   :  { %v1064_v12 = vpack.c.bf16 %v1056_v4, %v1048_v40  ;;  %v1066_v13 = vpack.c.bf16 %v1058_v5, %v1050_v2 }
 0x3e6   :  { %v1065_v14 = vpack.c.bf16 %v1057_v8, %v1049_v6  ;;  %v1067_v16 = vpack.c.bf16 %v1059_v10, %v1051_v7 }
 0x3e8   :  { %1104 = vmatprep.mubr.bf16.mxu0 %v1065_v14  ;;  %1145 = vmatprep.mubr.bf16.mxu1 %v1067_v16 }
 0x3e9   :  { %1105 = vmatmul.mubr.bf16.vlgmr.msra.gmra.mrb[16].mxu0 %v1064_v12  ;;  %1146 = vmatmul.mubr.bf16.vlgmr.msra.gmra.mrb[16].mxu1 %v1066_v13 }
 0x3ea   :  { %1552 = vmatpush3.bf16.msra.mxu0 %v1934_v46  ;;  %1574 = vmatpush3.bf16.msra.mxu1 %v1937_v47 }
 0x3eb   :  { %1553 = vmatprep.subr.bf16.mxu0 %v1940_v48  ;;  %1575 = vmatprep.subr.bf16.mxu1 %v1943_v49 }
 0x3ee   :  { %1554 = vmatpush3.bf16.msra.mxu0 %v1946_v50  ;;  %1576 = vmatpush3.bf16.msra.mxu1 %v1949_v51 }
 0x3ef   :  { %1555 = vmatprep.subr.bf16.mxu0 %v1952_v52  ;;  %1577 = vmatprep.subr.bf16.mxu1 %v1955_v53 }
 0x3f2   :  { %1556 = vmatpush3.bf16.msra.mxu0 %v1958_v54  ;;  %1578 = vmatpush3.bf16.msra.mxu1 %v1961_v55 }
 0x3f3   :  { %1557 = vmatprep.subr.bf16.mxu0 %v1964_v56  ;;  %1579 = vmatprep.subr.bf16.mxu1 %v1967_v57  ;;  %v2387_v56 = vld [vmem:[#allocation49_spill] sm:$0xff] }
 0x3f6   :  { %1558 = vmatpush3.bf16.msra.mxu0 %v1970_v58  ;;  %1580 = vmatpush3.bf16.msra.mxu1 %v1973_v59  ;;  %v2388_v58 = vld [vmem:[#allocation51_spill] sm:$0xff] }
 0x3f7   :  { %1559 = vmatprep.subr.bf16.mxu0 %v1976_v60  ;;  %1581 = vmatprep.subr.bf16.mxu1 %v1979_v61 }
 0x3fa   :  { %1560 = vmatpush3.bf16.msra.mxu0 %v1982_v62  ;;  %1582 = vmatpush3.bf16.msra.mxu1 %v1985_v63 }
 0x3fb   :  { %1561 = vmatprep.subr.bf16.mxu0 %v2353_v25  ;;  %1583 = vmatprep.subr.bf16.mxu1 %v2354_v42  ;;  %v2390_v25 = vld [vmem:[#allocation47_spill] sm:$0xff] }
 0x3fe   :  { %1562 = vmatpush3.bf16.msra.mxu0 %v2355_v44  ;;  %1584 = vmatpush3.bf16.msra.mxu1 %v2356_v35 }
 0x3ff   :  { %1563 = vmatprep.subr.bf16.mxu0 %v2357_v23  ;;  %1585 = vmatprep.subr.bf16.mxu1 %v2358_v22 }
 0x402   :  { %1564 = vmatpush3.bf16.msra.mxu0 %v2359_v26  ;;  %1586 = vmatpush3.bf16.msra.mxu1 %v2360_v29  ;;  %v2391_v26 = vld [vmem:[#allocation50_spill] sm:$0xff] }
 0x403   :  { %1565 = vmatprep.subr.bf16.mxu0 %v2361_v24  ;;  %1587 = vmatprep.subr.bf16.mxu1 %v2362_v20  ;;  %v2392_v24 = vld [vmem:[#allocation52_spill] sm:$0xff] }
 0x406   :  { %1566 = vmatpush3.bf16.msra.mxu0 %v2363_v30  ;;  %1588 = vmatpush3.bf16.msra.mxu1 %v2021_v37 }
 0x418   :  { %v932_v46 = vpop.f32.mrb[12].mxu0  ;;  %v975_v47 = vpop.f32.mrb[12].mxu1 }
 0x419   :  { %v988_v48 = vmul.f32 0.0014, %v932_v46  ;;  %v990_v49 = vmul.f32 0.0014, %v975_v47  ;;  %v934_v50 = vpop.f32.mrb[13].mxu0  ;;  %v977_v51 = vpop.f32.mrb[13].mxu1 }
 0x41a   :  { %v989_v52 = vmul.f32 0.0014, %v934_v50  ;;  %v991_v53 = vmul.f32 0.0014, %v977_v51  ;;  %v936_v54 = vpop.f32.mrb[14].mxu0  ;;  %v979_v55 = vpop.f32.mrb[14].mxu1 }
 0x41b   :  { %v1004_v57 = vadd.f32 %v988_v48, %v2387_v56  ;;  %v1006_v59 = vadd.f32 %v990_v49, %v2388_v58  ;;  %v996_v60 = vmul.f32 0.0014, %v936_v54  ;;  %v998_v61 = vmul.f32 0.0014, %v979_v55  ;;  %v938_v62 = vpop.f32.mrb[15].mxu0  ;;  %v981_v63 = vpop.f32.mrb[15].mxu1 }
 0x41c   :  { %v1005_v37 = vadd.f32 %v989_v52, %v2389_v31  ;;  %v1007_v42 = vadd.f32 %v991_v53, %v2390_v25  ;;  %v997_v44 = vmul.f32 0.0014, %v938_v62  ;;  %v999_v35 = vmul.f32 0.0014, %v981_v63 }
 0x41d   :  { %v1020_v23 = vmax.f32 %v1004_v57, 0.0  ;;  %v1022_v22 = vmax.f32 %v1006_v59, 0.0  ;;  %v1012_v29 = vadd.f32 %v996_v60, %v2391_v26  ;;  %v1014_v20 = vadd.f32 %v998_v61, %v2392_v24 }
 0x41e   :  { %v1021_v30 = vmax.f32 %v1005_v37, 0.0  ;;  %v1023_v32 = vmax.f32 %v1007_v42, 0.0  ;;  %v1013_v1 = vadd.f32 %v997_v44, %v2393_v34  ;;  %v1015_v9 = vadd.f32 %v999_v35, %v2394_v3 }
 0x41f   :  { %v1036_v11 = vmin.f32 %v1020_v23, 1.0  ;;  %v1038_v15 = vmin.f32 %v1022_v22, 1.0  ;;  %v1028_v17 = vmax.f32 %v1012_v29, 0.0  ;;  %v1030_v18 = vmax.f32 %v1014_v20, 0.0 }
 0x420   :  { %v1037_v21 = vmin.f32 %v1021_v30, 1.0  ;;  %v1039_v19 = vmin.f32 %v1023_v32, 1.0  ;;  %v1029_v41 = vmax.f32 %v1013_v1, 0.0  ;;  %v1031_v36 = vmax.f32 %v1015_v9, 0.0 }
 0x421   :  { %v1044_v38 = vmin.f32 %v1028_v17, 1.0  ;;  %v1046_v45 = vmin.f32 %v1030_v18, 1.0  ;;  %v1052_v43 = vsub.f32 %v1036_v11, %v2387_v56  ;;  %v1054_v39 = vsub.f32 %v1038_v15, %v2388_v58 }
 0x422   :  { %v1045_v27 = vmin.f32 %v1029_v41, 1.0  ;;  %v1047_v0 = vmin.f32 %v1031_v36, 1.0  ;;  %v1053_v2 = vsub.f32 %v1037_v21, %v2389_v31  ;;  %v1055_v4 = vsub.f32 %v1039_v19, %v2390_v25 }
 0x423   :  { %v1060_v28 = vsub.f32 %v1044_v38, %v2391_v26  ;;  %v1062_v40 = vsub.f32 %v1046_v45, %v2392_v24  ;;  %v2395_v24 = vld [vmem:[#allocation53_spill] sm:$0xff] }
 0x424   :  { %v1061_v5 = vsub.f32 %v1045_v27, %v2393_v34  ;;  %v1063_v6 = vsub.f32 %v1047_v0, %v2394_v3 }
 0x425   :  { %v1068_v7 = vpack.c.bf16 %v1060_v28, %v1052_v43  ;;  %v1070_v8 = vpack.c.bf16 %v1062_v40, %v1054_v39 }
 0x426   :  { %v1069_v10 = vpack.c.bf16 %v1061_v5, %v1053_v2  ;;  %v1071_v12 = vpack.c.bf16 %v1063_v6, %v1055_v4 }
 0x428   :  { %1186 = vmatprep.mubr.bf16.mxu0 %v1069_v10  ;;  %1227 = vmatprep.mubr.bf16.mxu1 %v1071_v12 }
 0x429   :  { %1187 = vmatmul.mubr.bf16.vlgmr.msra.gmra.mrb[20].mxu0 %v1068_v7  ;;  %1228 = vmatmul.mubr.bf16.vlgmr.msra.gmra.mrb[20].mxu1 %v1070_v8 }
 0x4bc   :  { %v1523_v13 = vpop.f32.mrb[16].mxu0  ;;  %v1545_v14 = vpop.f32.mrb[16].mxu1 }
 0x4bd   :  { %v1524_v16 = vpop.f32.mrb[17].mxu0  ;;  %v1546_v46 = vpop.f32.mrb[17].mxu1 }
 0x4be   :  { %v1525_v47 = vadd.f32 %v1524_v16, %v1523_v13  ;;  %v1547_v48 = vadd.f32 %v1546_v46, %v1545_v14  ;;  %v1526_v49 = vpop.f32.mrb[18].mxu0  ;;  %v1548_v50 = vpop.f32.mrb[18].mxu1 }
 0x4bf   :  { %v1527_v51 = vpop.f32.mrb[19].mxu0  ;;  %v1549_v52 = vpop.f32.mrb[19].mxu1 }
 0x4c0   :  { %v1148_v53 = vadd.f32 %v1547_v48, %v1525_v47  ;;  %v1528_v54 = vadd.f32 %v1527_v51, %v1526_v49  ;;  %v1550_v55 = vadd.f32 %v1549_v52, %v1548_v50 }
 0x4c2   :  { %v1151_v56 = vadd.f32 %v1550_v55, %v1528_v54 }
 0x4fc   :  { %v1567_v57 = vpop.f32.mrb[20].mxu0  ;;  %v1589_v58 = vpop.f32.mrb[20].mxu1 }
 0x4fd   :  { %v1568_v59 = vpop.f32.mrb[21].mxu0  ;;  %v1590_v60 = vpop.f32.mrb[21].mxu1 }
 0x4fe   :  { %v1569_v61 = vadd.f32 %v1568_v59, %v1567_v57  ;;  %v1591_v62 = vadd.f32 %v1590_v60, %v1589_v58  ;;  %v1570_v63 = vpop.f32.mrb[22].mxu0  ;;  %v1592_v31 = vpop.f32.mrb[22].mxu1 }
 0x4ff   :  { %v1571_v37 = vpop.f32.mrb[23].mxu0  ;;  %v1593_v25 = vpop.f32.mrb[23].mxu1 }
 0x500   :  { %v1189_v42 = vadd.f32 %v1569_v61, %v1148_v53  ;;  %v1572_v44 = vadd.f32 %v1571_v37, %v1570_v63  ;;  %v1594_v35 = vadd.f32 %v1593_v25, %v1592_v31 }
 0x502   :  { %v1230_v23 = vadd.f32 %v1591_v62, %v1189_v42  ;;  %v1192_v22 = vadd.f32 %v1572_v44, %v1151_v56 }
 0x504   :  { %v1233_v26 = vadd.f32 %v1594_v35, %v1192_v22  ;;  %v1236_v29 = vadd.f32 %v1230_v23, %v2086_v33 }
 0x506   :  { %1238 = vmax.xlane.f32.xlu0 %v1236_v29  ;;  %v1237_v20 = vadd.f32 %v1233_v26, %v2395_v24 }
 0x508   :  { %1240 = vmax.xlane.f32.xlu1 %v1237_v20 }
 0x593   :  { %v1239_v30 = vpop.xlane.xlu0 %1238 }
 0x594   :  { %v1242_v32 = vsub.f32 %v1236_v29, %v1239_v30 }
 0x595   :  { %v1241_v34 = vpop.xlane.xlu1 %1240 }
 0x596   :  { %v1244_v1 = vmul.f32 1.442695, %v1242_v32  ;;  %v1243_v3 = vsub.f32 %v1237_v20, %v1241_v34 }
 0x598   :  { %1676 = vpow2.f32 %v1244_v1  ;;  %v1246_v9 = vmul.f32 1.442695, %v1243_v3 }
 0x59a   :  { %1678 = vpow2.f32 %v1246_v9 }
 0x5a2   :  { %v1677_v11 = vpop.eup %1676 }
 0x5a3   :  { %1248 = vadd.xlane.f32.xlu0 %v1677_v11 }
 0x5a4   :  { %v1679_v15 = vpop.eup %1678 }
 0x5a5   :  { %1250 = vadd.xlane.f32.xlu1 %v1679_v15 }
 0x630   :  { %v1249_v17 = vpop.xlane.xlu0 %1248 }
 0x631   :  { %1680 = vlog2.f32 %v1249_v17 }
 0x632   :  { %v1251_v18 = vpop.xlane.xlu1 %1250 }
 0x633   :  { %1682 = vlog2.f32 %v1251_v18 }
 0x63b   :  { %v1681_v33 = vpop.eup %1680 }
 0x63c   :  { %v1253_v21 = vmul.f32 0.6931472, %v1681_v33 }
 0x63d   :  { %v1683_v19 = vpop.eup %1682 }
 0x63e   :  { %v1256_v41 = vadd.f32 %v1253_v21, %v1239_v30  ;;  %v1255_v36 = vmul.f32 0.6931472, %v1683_v19 }
 0x640   :  { %v1258_v38 = vsub.f32 %v1236_v29, %v1256_v41  ;;  %v1257_v45 = vadd.f32 %v1255_v36, %v1241_v34 }
 0x642   :  { %1260 = vst [vmem:[#allocation7] sm:$0xff] %v1258_v38  ;;  %v1259_v27 = vsub.f32 %v1237_v20, %v1257_v45 }
 0x644   :  { %1261 = vst [vmem:[#allocation7 + $0x8] sm:$0xff] %v1259_v27 }
 0x645   :  { %1739 = shalt.err (!%p1736_p6)
}
 0x646   :  { %s1740_s16 = scalar_lea.hbm %s2239_s3, 256 }
 0x647   :  { %p1741_p7 = scmp.ne.s32.totalorder %s2239_s3, %s1740_s16  ;;  %p1744_p8 = scmp.lt.u32.totalorder %s1740_s16, %s2239_s3 }
 0x649   :  { %p1746_p9 = pnand %p1744_p8, %p1741_p7 }
 0x64b   :  { %1749 = shalt.err (!%p1746_p9)
}
 0x64c   :  { %s1763_s21 = smov 128   ;;  %s1764_s22 = smov 8  }
 0x64d   :  { %1273 = dma.vmem_to_hbm [thread:$0]  %s1268_s12, 256, %s2239_s3, [#allocation4], %s1763_s21, %s1763_s21, %s1764_s22  }
 0x64e   :  { %1754 = dma.done.wait [#allocation4], 256  }
 0x64f   :  { %1755 = vsyncadd [#allocation4], 4294967040 }
 0x650   :  { %1277 = vsyncpa [#allocation3], 1 }
 0x651   :  { %1278 = vsyncpa [#allocation6], 1 }
 0x652   :  { %1279 = vsyncpa [#allocation4], 1 }

</bundles_post_ra>
